<compile_context>
chip_gen: v7x
topology: tpu7x:2x2x1
jax: 0.10.0
libtpu: 0.0.40
codegen_flags: <defaults>
</compile_context>

<pallas_src>
import functools

import jax
import jax.numpy as jnp
from jax.experimental import pallas as pl
from jax.experimental.pallas import tpu as pltpu

LANE = 128  # TPU lane width; hidden(32) and out(7) feature dims pad to this.


def _round_up(x, m):
    return ((x + m - 1) // m) * m


def _pick_tile(n_padded):
    # Biggest tile that divides the padded N: 512+ tiles reach ~85% of the HBM
    # roofline; 128 is the floor (toy graphs).
    for t in (1024, 512, 256, 128):
        if n_padded >= t and n_padded % t == 0:
            return t
    return 128


# ----------------------------------------------------------------------------
# Kernel: grid = (layer, row tile i, contraction tile k); k innermost.
# ----------------------------------------------------------------------------
def fused_gcn2_kernel(adj_ref, hw1_ref, b1_ref, w2t_ref, b2_ref, out_ref,
                      x2_ref, acc_ref):
    # adj_ref : [TI, TK]  int8   A[dst, src] in {0,1}, zero-padded
    # hw1_ref : [Np, 128] bf16   H0 @ W1^T (layer-1 premultiply), VMEM-resident
    # b1_ref  : [1, 128]  f32    w2t_ref: [128, 128] bf16    b2_ref: [1, 128] f32
    # out_ref : [TI, 128] bf16   ReLU(A @ HW2 + b2) for row tile i
    # x2_ref  : [Np, 128] bf16   scratch: HW2 = ReLU(A@HW1+b1) @ W2^T (persists)
    # acc_ref : [TI, 128] f32    scratch: k-reduction accumulator
    layer = pl.program_id(0)
    i = pl.program_id(1)
    k = pl.program_id(2)
    nk = pl.num_programs(2)
    ti = acc_ref.shape[0]
    tk = adj_ref.shape[1]

    @pl.when(k == 0)
    def _init():
        acc_ref[...] = jnp.zeros_like(acc_ref)

    # 1-byte adjacency -> bf16 on the VPU (exact for {0,1}); MXU runs bf16.
    a = adj_ref[...].astype(jnp.bfloat16)
    k_off = pl.multiple_of(k * tk, tk)

    @pl.when(layer == 0)
    def _acc_layer1():
        acc_ref[...] += jnp.dot(a, hw1_ref[pl.ds(k_off, tk), :],
                                preferred_element_type=jnp.float32)

    @pl.when(layer == 1)
    def _acc_layer2():
        acc_ref[...] += jnp.dot(a, x2_ref[pl.ds(k_off, tk), :],
                                preferred_element_type=jnp.float32)

    # Layer-1 finalize (once per row tile, outside the k loop): bias + ReLU,
    # then premultiply by W2^T so layer 2 streams a 128-lane right operand.
    @pl.when((k == nk - 1) & (layer == 0))
    def _fin_layer1():
        h1 = jnp.maximum(acc_ref[...] + b1_ref[...], 0.0)          # [TI,128] f32
        hw2 = jnp.dot(h1.astype(jnp.bfloat16), w2t_ref[...],
                      preferred_element_type=jnp.float32)
        i_off = pl.multiple_of(i * ti, ti)
        x2_ref[pl.ds(i_off, ti), :] = hw2.astype(jnp.bfloat16)
        out_ref[...] = jnp.zeros_like(out_ref)   # keep layer-0 writeback defined

    # Layer-2 finalize: bias + ReLU, lane-dense bf16 store.
    @pl.when((k == nk - 1) & (layer == 1))
    def _fin_layer2():
        out_ref[...] = jnp.maximum(acc_ref[...] + b2_ref[...],
                                   0.0).astype(out_ref.dtype)


def _fused_call(adj_p, hw1, b1, w2t, b2, *, tile):
    n_p = adj_p.shape[0]
    hid_p = hw1.shape[1]
    out_p = w2t.shape[1]
    assert hid_p == out_p == LANE          # single acc buffer serves both layers
    assert n_p % tile == 0
    ni = n_p // tile
    nk = n_p // tile

    return pl.pallas_call(
        fused_gcn2_kernel,
        out_shape=jax.ShapeDtypeStruct((n_p, out_p), jnp.bfloat16),
        grid_spec=pltpu.PrefetchScalarGridSpec(
            num_scalar_prefetch=0,
            grid=(2, ni, nk),
            in_specs=[
                pl.BlockSpec((tile, tile), lambda l, i, k: (i, k)),     # A (int8)
                pl.BlockSpec((n_p, hid_p), lambda l, i, k: (0, 0)),     # HW1 resident
                pl.BlockSpec((1, hid_p), lambda l, i, k: (0, 0)),       # b1
                pl.BlockSpec((hid_p, out_p), lambda l, i, k: (0, 0)),   # W2^T
                pl.BlockSpec((1, out_p), lambda l, i, k: (0, 0)),       # b2
            ],
            out_specs=pl.BlockSpec((tile, out_p), lambda l, i, k: (i, 0)),
            scratch_shapes=[
                pltpu.VMEM((n_p, hid_p), jnp.bfloat16),   # x2: HW2, persists layer0->1
                pltpu.VMEM((tile, out_p), jnp.float32),   # acc: k-reduction
            ],
        ),
        compiler_params=pltpu.CompilerParams(
            # layer axis is a true dependency, k is the reduction, and the row
            # axis must stay on one core because layer 2 reads HW2 rows from
            # *all* row tiles out of core-private VMEM scratch.
            dimension_semantics=("arbitrary", "arbitrary", "arbitrary"),
            # Fits v7x's 64 MiB physical VMEM with headroom; can be raised
            # toward ~96-112 MiB on v5e/v6e.
            vmem_limit_bytes=48 * 1024 * 1024,
        ),
    )(adj_p, hw1, b1, w2t, b2)


# ----------------------------------------------------------------------------
# One-time preparation (hoisted out of the forward path)
# ----------------------------------------------------------------------------
def prepare_graph(adj):
    """Pad N to a multiple of 128 and store A[dst,src] as int8 ({0,1} exact).

    Done once, next to the weights, so the jitted forward never re-pads or
    re-casts the N^2 adjacency (it is the dominant HBM stream, read twice per
    forward).  TODO(synk): fp8 (e4m3) storage + direct MXU feed on v7x."""
    n = adj.shape[0]
    n_p = _round_up(max(n, LANE), LANE)
    adj_p = jnp.zeros((n_p, n_p), jnp.int8)
    adj_p = adj_p.at[:n, :n].set(adj.astype(jnp.int8))
    return adj_p


def prepare_params(params, in_feats, hidden, out_feats):
    """One-time layout: transpose to [Fin, Fout], zero-pad to 128 lanes, cast.

    Weights -> bf16 (MXU inputs), biases -> f32 (added post-accumulation)."""
    assert hidden <= LANE and out_feats <= LANE
    in_p = _round_up(in_feats, LANE)
    hid_p = LANE
    out_p = LANE

    w1t = jnp.zeros((in_p, hid_p), jnp.bfloat16)
    w1t = w1t.at[:in_feats, :hidden].set(params["w1"].T.astype(jnp.bfloat16))
    b1 = jnp.zeros((1, hid_p), jnp.float32)
    b1 = b1.at[0, :hidden].set(params["b1"].astype(jnp.float32))

    w2t = jnp.zeros((hid_p, out_p), jnp.bfloat16)
    w2t = w2t.at[:hidden, :out_feats].set(params["w2"].T.astype(jnp.bfloat16))
    b2 = jnp.zeros((1, out_p), jnp.float32)
    b2 = b2.at[0, :out_feats].set(params["b2"].astype(jnp.float32))
    return w1t, b1, w2t, b2


# ----------------------------------------------------------------------------
# Forward
# ----------------------------------------------------------------------------
@functools.partial(jax.jit, static_argnames=("out_feats",))
def net_forward(adj_p, features, w1t, b1, w2t, b2, *, out_feats):
    """Net.forward: gcn1 (in->32, ReLU) then gcn2 (32->out, ReLU).

    HW1 = H0 @ W1^T runs as a plain XLA GEMM (features are read from HBM once
    either way; HW1 is only [Np, 128]); both N^2 aggregations, bias+ReLU and
    the layer-2 premultiply are fused in ONE tiled pallas_call with the hidden
    activations kept in VMEM between the two aggregation passes."""
    n, fin = features.shape
    n_p = adj_p.shape[0]
    fin_p = w1t.shape[0]

    # Per-call feature pad + cast (features change per call; A is pre-padded).
    h0 = jnp.zeros((n_p, fin_p), jnp.bfloat16)
    h0 = h0.at[:n, :fin].set(features.astype(jnp.bfloat16))
    hw1 = jnp.dot(h0, w1t, preferred_element_type=jnp.float32).astype(jnp.bfloat16)

    tile = _pick_tile(n_p)
    out_p = _fused_call(adj_p, hw1, b1, w2t, b2, tile=tile)
    return out_p[:n, :out_feats].astype(jnp.float32)


# ---------------------------- init helpers (match the PyTorch module) --------
def kaiming_normal(key, shape):
    # torch.nn.init.kaiming_normal_(w, a=0, mode='fan_in', nonlinearity='leaky_relu')
    fan_in = shape[1]
    std = (2.0 / fan_in) ** 0.5
    return std * jax.random.normal(key, shape, dtype=jnp.float32)


def linear_bias(key, fan_in, out_feats):
    # nn.Linear default bias init: U(-1/sqrt(fan_in), 1/sqrt(fan_in))
    bound = 1.0 / (fan_in ** 0.5)
    return jax.random.uniform(key, (out_feats,), jnp.float32, -bound, bound)


def reference_forward(adj, features, params):
    h1 = jnp.maximum(adj @ features @ params["w1"].T + params["b1"], 0.0)
    h2 = jnp.maximum(adj @ h1 @ params["w2"].T + params["b2"], 0.0)
    return h2


if __name__ == "__main__":
    # Small shapes consistent with the module (input_num -> 32 -> output_num)
    N_NODES = 8
    IN_FEATS = 16
    HIDDEN = 32
    OUT_FEATS = 7

    key = jax.random.PRNGKey(0)
    k_feat, k_edge, k_w1, k_b1, k_w2, k_b2 = jax.random.split(key, 6)

    features = jax.random.normal(k_feat, (N_NODES, IN_FEATS), dtype=jnp.float32)

    # Deterministic small directed graph: ring (every node gets a message) plus
    # a few extra edges.  adj[dst, src] = 1.
    adj = jnp.zeros((N_NODES, N_NODES), dtype=jnp.float32)
    ring_src = jnp.arange(N_NODES)
    ring_dst = (ring_src + 1) % N_NODES
    adj = adj.at[ring_dst, ring_src].set(1.0)
    extra_src = jax.random.randint(k_edge, (N_NODES,), 0, N_NODES)
    extra_dst = (extra_src + 3) % N_NODES
    adj = adj.at[extra_dst, extra_src].set(1.0)

    params = {
        "w1": kaiming_normal(k_w1, (HIDDEN, IN_FEATS)),
        "b1": linear_bias(k_b1, IN_FEATS, HIDDEN),
        "w2": kaiming_normal(k_w2, (OUT_FEATS, HIDDEN)),
        "b2": linear_bias(k_b2, HIDDEN, OUT_FEATS),
    }

    # One-time layout: int8 padded adjacency + transposed/padded bf16 weights.
    adj_p = prepare_graph(adj)
    w1t, b1, w2t, b2 = prepare_params(params, IN_FEATS, HIDDEN, OUT_FEATS)

    out = net_forward(adj_p, features, w1t, b1, w2t, b2, out_feats=OUT_FEATS)
    out = jax.block_until_ready(out)

    assert out.shape == (N_NODES, OUT_FEATS)
    assert bool(jnp.all(jnp.isfinite(out)))

    # Correctness vs. f32 reference (bf16 MXU inputs / bf16 output -> loose tol).
    ref = reference_forward(adj, features, params)
    assert bool(jnp.allclose(out, ref, rtol=5e-2, atol=1e-1)), (
        f"max abs err {float(jnp.max(jnp.abs(out - ref)))}")

    print("KERNEL_OK")
</pallas_src>

<mosaic_0001>
module attributes {stable_mosaic.version = 11 : i64} {
  func.func @fused_gcn2_kernel(%arg0: i32, %arg1: i32, %arg2: i32, %arg3: memref<128x128xi8, #tpu.memory_space<vmem>>, %arg4: memref<128x128xbf16, #tpu.memory_space<vmem>>, %arg5: memref<1x128xf32, #tpu.memory_space<vmem>>, %arg6: memref<128x128xbf16, #tpu.memory_space<vmem>>, %arg7: memref<1x128xf32, #tpu.memory_space<vmem>>, %arg8: memref<128x128xbf16, #tpu.memory_space<vmem>>, %arg9: memref<128x128xbf16, #tpu.memory_space<vmem>>, %arg10: memref<128x128xf32, #tpu.memory_space<vmem>>) attributes {dimension_semantics = [#tpu.dimension_semantics<arbitrary>, #tpu.dimension_semantics<arbitrary>, #tpu.dimension_semantics<arbitrary>], iteration_bounds = array<i64: 2, 1, 1>, scalar_prefetch = 0 : i64, scratch_operands = 2 : i64, tpu.core_type = #tpu.core_type<tc>, window_params = [{transform_indices = @transform_0, window_bounds = array<i64: 128, 128>}, {pipeline_mode = #tpu.pipeline_mode<synchronous>, transform_indices = @transform_1, window_bounds = array<i64: 128, 128>}, {pipeline_mode = #tpu.pipeline_mode<synchronous>, transform_indices = @transform_2, window_bounds = array<i64: 1, 128>}, {pipeline_mode = #tpu.pipeline_mode<synchronous>, transform_indices = @transform_3, window_bounds = array<i64: 128, 128>}, {pipeline_mode = #tpu.pipeline_mode<synchronous>, transform_indices = @transform_4, window_bounds = array<i64: 1, 128>}, {transform_indices = @transform_5, window_bounds = array<i64: 128, 128>}]} {
    %c0_i32 = arith.constant 0 : i32
    %0 = arith.cmpi eq, %arg2, %c0_i32 : i32
    %1 = arith.extui %0 : i1 to i32
    %c0_i32_0 = arith.constant 0 : i32
    %2 = arith.cmpi ne, %1, %c0_i32_0 : i32
    scf.if %2 {
      %cst = arith.constant 0.000000e+00 : f32
      %23 = vector.broadcast %cst : f32 to vector<128x128xf32>
      %c0_11 = arith.constant 0 : index
      %c0_12 = arith.constant 0 : index
      %24 = vector.load %arg10[%c0_11, %c0_12] : memref<128x128xf32, #tpu.memory_space<vmem>>, vector<128x128xf32>
      tpu.vector_store %arg10[%c0_11, %c0_12], %23 {strides = array<i32>} : memref<128x128xf32, #tpu.memory_space<vmem>>, vector<128x128xf32>,
    } else {
    }
    %c0 = arith.constant 0 : index
    %c0_1 = arith.constant 0 : index
    %3 = vector.load %arg3[%c0, %c0_1] : memref<128x128xi8, #tpu.memory_space<vmem>>, vector<128x128xi8>
    %4 = arith.sitofp %3 : vector<128x128xi8> to vector<128x128xbf16>
    %c128_i32 = arith.constant 128 : i32
    %5 = arith.muli %arg2, %c128_i32 : i32
    %6 = tpu.assume_multiple %5, 128 : i32
    %c0_i32_2 = arith.constant 0 : i32
    %7 = arith.cmpi eq, %arg0, %c0_i32_2 : i32
    %8 = arith.extui %7 : i1 to i32
    %c0_i32_3 = arith.constant 0 : i32
    %9 = arith.cmpi ne, %8, %c0_i32_3 : i32
    scf.if %9 {
      %c0_11 = arith.constant 0 : index
      %c0_12 = arith.constant 0 : index
      %23 = vector.load %arg10[%c0_11, %c0_12] : memref<128x128xf32, #tpu.memory_space<vmem>>, vector<128x128xf32>
      %24 = arith.index_cast %6 : i32 to index
      %c0_13 = arith.constant 0 : index
      %25 = vector.load %arg4[%24, %c0_13] : memref<128x128xbf16, #tpu.memory_space<vmem>>, vector<128x128xbf16>
      %cst = arith.constant dense<0.000000e+00> : vector<128x128xf32>
      %26 = tpu.matmul %4, %25, %cst {dimension_numbers = #tpu.dot_dimension_numbers<[1], [0], [0], [1], [0, 0, 1, 1], [], []>} : vector<128x128xbf16>, vector<128x128xbf16>, vector<128x128xf32> -> vector<128x128xf32>
      %27 = arith.addf %23, %26 : vector<128x128xf32>
      %c0_14 = arith.constant 0 : index
      %c0_15 = arith.constant 0 : index
      %28 = vector.load %arg10[%c0_14, %c0_15] : memref<128x128xf32, #tpu.memory_space<vmem>>, vector<128x128xf32>
      tpu.vector_store %arg10[%c0_14, %c0_15], %27 {strides = array<i32>} : memref<128x128xf32, #tpu.memory_space<vmem>>, vector<128x128xf32>,
    } else {
    }
    %c1_i32 = arith.constant 1 : i32
    %10 = arith.cmpi eq, %arg0, %c1_i32 : i32
    %11 = arith.extui %10 : i1 to i32
    %c0_i32_4 = arith.constant 0 : i32
    %12 = arith.cmpi ne, %11, %c0_i32_4 : i32
    scf.if %12 {
      %c0_11 = arith.constant 0 : index
      %c0_12 = arith.constant 0 : index
      %23 = vector.load %arg10[%c0_11, %c0_12] : memref<128x128xf32, #tpu.memory_space<vmem>>, vector<128x128xf32>
      %24 = arith.index_cast %6 : i32 to index
      %c0_13 = arith.constant 0 : index
      %25 = vector.load %arg9[%24, %c0_13] : memref<128x128xbf16, #tpu.memory_space<vmem>>, vector<128x128xbf16>
      %cst = arith.constant dense<0.000000e+00> : vector<128x128xf32>
      %26 = tpu.matmul %4, %25, %cst {dimension_numbers = #tpu.dot_dimension_numbers<[1], [0], [0], [1], [0, 0, 1, 1], [], []>} : vector<128x128xbf16>, vector<128x128xbf16>, vector<128x128xf32> -> vector<128x128xf32>
      %27 = arith.addf %23, %26 : vector<128x128xf32>
      %c0_14 = arith.constant 0 : index
      %c0_15 = arith.constant 0 : index
      %28 = vector.load %arg10[%c0_14, %c0_15] : memref<128x128xf32, #tpu.memory_space<vmem>>, vector<128x128xf32>
      tpu.vector_store %arg10[%c0_14, %c0_15], %27 {strides = array<i32>} : memref<128x128xf32, #tpu.memory_space<vmem>>, vector<128x128xf32>,
    } else {
    }
    %c0_i32_5 = arith.constant 0 : i32
    %13 = arith.cmpi eq, %arg2, %c0_i32_5 : i32
    %c0_i32_6 = arith.constant 0 : i32
    %14 = arith.cmpi eq, %arg0, %c0_i32_6 : i32
    %15 = arith.andi %13, %14 : i1
    %16 = arith.extui %15 : i1 to i32
    %c0_i32_7 = arith.constant 0 : i32
    %17 = arith.cmpi ne, %16, %c0_i32_7 : i32
    scf.if %17 {
      %c0_11 = arith.constant 0 : index
      %c0_12 = arith.constant 0 : index
      %23 = vector.load %arg10[%c0_11, %c0_12] : memref<128x128xf32, #tpu.memory_space<vmem>>, vector<128x128xf32>
      %c0_13 = arith.constant 0 : index
      %c0_14 = arith.constant 0 : index
      %24 = vector.load %arg5[%c0_13, %c0_14] : memref<1x128xf32, #tpu.memory_space<vmem>>, vector<1x128xf32>
      %25 = vector.broadcast %24 : vector<1x128xf32> to vector<128x128xf32>
      %26 = arith.addf %23, %25 : vector<128x128xf32>
      %cst = arith.constant 0.000000e+00 : f32
      %27 = vector.broadcast %cst : f32 to vector<128x128xf32>
      %28 = arith.maximumf %26, %27 : vector<128x128xf32>
      %29 = arith.truncf %28 : vector<128x128xf32> to vector<128x128xbf16>
      %c0_15 = arith.constant 0 : index
      %c0_16 = arith.constant 0 : index
      %30 = vector.load %arg6[%c0_15, %c0_16] : memref<128x128xbf16, #tpu.memory_space<vmem>>, vector<128x128xbf16>
      %cst_17 = arith.constant dense<0.000000e+00> : vector<128x128xf32>
      %31 = tpu.matmul %29, %30, %cst_17 {dimension_numbers = #tpu.dot_dimension_numbers<[1], [0], [0], [1], [0, 0, 1, 1], [], []>} : vector<128x128xbf16>, vector<128x128xbf16>, vector<128x128xf32> -> vector<128x128xf32>
      %c128_i32_18 = arith.constant 128 : i32
      %32 = arith.muli %arg1, %c128_i32_18 : i32
      %33 = tpu.assume_multiple %32, 128 : i32
      %34 = arith.truncf %31 : vector<128x128xf32> to vector<128x128xbf16>
      %35 = arith.index_cast %33 : i32 to index
      %c0_19 = arith.constant 0 : index
      %36 = vector.load %arg9[%35, %c0_19] : memref<128x128xbf16, #tpu.memory_space<vmem>>, vector<128x128xbf16>
      tpu.vector_store %arg9[%35, %c0_19], %34 {strides = array<i32>} : memref<128x128xbf16, #tpu.memory_space<vmem>>, vector<128x128xbf16>,
      %cst_20 = arith.constant 0.000000e+00 : bf16
      %37 = vector.broadcast %cst_20 : bf16 to vector<128x128xbf16>
      %c0_21 = arith.constant 0 : index
      %c0_22 = arith.constant 0 : index
      %38 = vector.load %arg8[%c0_21, %c0_22] : memref<128x128xbf16, #tpu.memory_space<vmem>>, vector<128x128xbf16>
      tpu.vector_store %arg8[%c0_21, %c0_22], %37 {strides = array<i32>} : memref<128x128xbf16, #tpu.memory_space<vmem>>, vector<128x128xbf16>,
    } else {
    }
    %c0_i32_8 = arith.constant 0 : i32
    %18 = arith.cmpi eq, %arg2, %c0_i32_8 : i32
    %c1_i32_9 = arith.constant 1 : i32
    %19 = arith.cmpi eq, %arg0, %c1_i32_9 : i32
    %20 = arith.andi %18, %19 : i1
    %21 = arith.extui %20 : i1 to i32
    %c0_i32_10 = arith.constant 0 : i32
    %22 = arith.cmpi ne, %21, %c0_i32_10 : i32
    scf.if %22 {
      %c0_11 = arith.constant 0 : index
      %c0_12 = arith.constant 0 : index
      %23 = vector.load %arg10[%c0_11, %c0_12] : memref<128x128xf32, #tpu.memory_space<vmem>>, vector<128x128xf32>
      %c0_13 = arith.constant 0 : index
      %c0_14 = arith.constant 0 : index
      %24 = vector.load %arg7[%c0_13, %c0_14] : memref<1x128xf32, #tpu.memory_space<vmem>>, vector<1x128xf32>
      %25 = vector.broadcast %24 : vector<1x128xf32> to vector<128x128xf32>
      %26 = arith.addf %23, %25 : vector<128x128xf32>
      %cst = arith.constant 0.000000e+00 : f32
      %27 = vector.broadcast %cst : f32 to vector<128x128xf32>
      %28 = arith.maximumf %26, %27 : vector<128x128xf32>
      %29 = arith.truncf %28 : vector<128x128xf32> to vector<128x128xbf16>
      %c0_15 = arith.constant 0 : index
      %c0_16 = arith.constant 0 : index
      %30 = vector.load %arg8[%c0_15, %c0_16] : memref<128x128xbf16, #tpu.memory_space<vmem>>, vector<128x128xbf16>
      tpu.vector_store %arg8[%c0_15, %c0_16], %29 {strides = array<i32>} : memref<128x128xbf16, #tpu.memory_space<vmem>>, vector<128x128xbf16>,
    } else {
    }
    return
  }
  func.func @transform_0(%arg0: i32, %arg1: i32, %arg2: i32) -> (i32, i32) {
    %c0_i32 = arith.constant 0 : i32
    return %arg1, %arg2 : i32, i32
  }
  func.func @transform_1(%arg0: i32, %arg1: i32, %arg2: i32) -> (i32, i32) {
    %c0_i32 = arith.constant 0 : i32
    %c0_i32_0 = arith.constant 0 : i32
    %c0_i32_1 = arith.constant 0 : i32
    return %c0_i32, %c0_i32_0 : i32, i32
  }
  func.func @transform_2(%arg0: i32, %arg1: i32, %arg2: i32) -> (i32, i32) {
    %c0_i32 = arith.constant 0 : i32
    %c0_i32_0 = arith.constant 0 : i32
    %c0_i32_1 = arith.constant 0 : i32
    return %c0_i32, %c0_i32_0 : i32, i32
  }
  func.func @transform_3(%arg0: i32, %arg1: i32, %arg2: i32) -> (i32, i32) {
    %c0_i32 = arith.constant 0 : i32
    %c0_i32_0 = arith.constant 0 : i32
    %c0_i32_1 = arith.constant 0 : i32
    return %c0_i32, %c0_i32_0 : i32, i32
  }
  func.func @transform_4(%arg0: i32, %arg1: i32, %arg2: i32) -> (i32, i32) {
    %c0_i32 = arith.constant 0 : i32
    %c0_i32_0 = arith.constant 0 : i32
    %c0_i32_1 = arith.constant 0 : i32
    return %c0_i32, %c0_i32_0 : i32, i32
  }
  func.func @transform_5(%arg0: i32, %arg1: i32, %arg2: i32) -> (i32, i32) {
    %c0_i32 = arith.constant 0 : i32
    %c0_i32_0 = arith.constant 0 : i32
    return %arg1, %c0_i32 : i32, i32
  }
}

</mosaic_0001>

<bundles_post_ra>
// kernel: net_forward.1
= control target key start
LH: loop header
LB: loop body
LE: loop exit
PB: predicated region body
PF: predicated region fallthrough
CT: control target
= control target key end

     0   :  { %s1552_s18 = smov 0   ;;  %s1554_s19 = smov 0   ;;  %s1793_s0 = inlined_call_operand.vmem [shape: s8[128,128], index: 0, kind: input, shape index: {}]   ;;  %s1794_s1 = inlined_call_operand.vmem [shape: bf16[128,128], index: 1, kind: input, shape index: {}]   ;;  %s1795_s2 = inlined_call_operand.vmem [shape: f32[1,128], index: 2, kind: input, shape index: {}]   ;;  %s1796_s3 = inlined_call_operand.vmem [shape: bf16[128,128], index: 3, kind: input, shape index: {}]   ;;  %s1797_s4 = inlined_call_operand.vmem [shape: f32[1,128], index: 4, kind: input, shape index: {}]   ;;  %s1798_s5 = inlined_call_operand.vmem [shape: bf16[128,128], index: 5, kind: output, shape index: {}]  }
   0x1   :  { %s1556_s20 = smov 0  }
   0x2 LB: > { %s34_s21 = sadd.s32 1, %s1514_s19  ;;  %p1154_p0 = scmp.ge.s32.totalorder %s1518_s20, 1  ;;  %s1518_s20 = sphi %s1556_s20, %s15_s20   ;;  %s1514_s19 = sphi %s1554_s19, %s1800_s19   ;;  %s1510_s18 = sphi %s1552_s18, %s1799_s18  }
   0x3   : > { %p36_p1 = scmp.ge.s32.totalorder %s34_s21, 2  ;;  %p212_p2 = scmp.lt.s32.totalorder %s1518_s20, 3 }
   0x5   : > { %s1802_s21 = smov (%p36_p1, %s34_s21), 0  ;;  %p213_p3 = pnand %p1154_p0, %p212_p2 }
   0x6   : > { %v1575_v0 = vld [vmem:[%s1793_s0] sm:$0xff] (!%p213_p3)  ;;  %v1580_v1 = vld [vmem:[%s1793_s0 + $0x8] sm:$0xff] (!%p213_p3)  ;;  %v1585_v2 = vld [vmem:[%s1793_s0 + $0x10] sm:$0xff] (!%p213_p3)  ;;  %p292_p4 = scmp.eq.s32.totalorder (!%p213_p3), %s1510_s18, 0  ;;  %v1520_v3 = vmov (!%p213_p3), 0.0   ;;  %p1155_p5 = scmp.ne.s32.totalorder (!%p213_p3), %s1510_s18, 0 }
   0x7   : > { %216 = sbr.rel (%p213_p3) target bundleno = 808 (0x328), region = 40  ;;  %263 = vst [vmem:[#allocation3] sm:$0xff] (!%p213_p3), %v1520_v3  ;;  %264 = vst [vmem:[#allocation3 + $0x8] sm:$0xff] (!%p213_p3), %v1520_v3  ;;  %v1591_v4 = vld [vmem:[%s1793_s0 + $0x18] sm:$0xff] (!%p213_p3)  ;;  %v283_v5 = vunpack.c.l.s8.bf16 (!%p213_p3), %v1575_v0  ;;  %v284_v6 = vunpack.c.h.s8.bf16 (!%p213_p3), %v1575_v0  ;;  %v285_v7 = vunpack.c.l.s8.bf16 (!%p213_p3), %v1580_v1  ;;  %v286_v8 = vunpack.c.h.s8.bf16 (!%p213_p3), %v1580_v1 }
   0x8   : > { %265 = vst [vmem:[#allocation3 + $0x10] sm:$0xff] (!%p213_p3), %v1520_v3  ;;  %266 = vst [vmem:[#allocation3 + $0x18] sm:$0xff] (!%p213_p3), %v1520_v3  ;;  %v287_v9 = vunpack.c.l.s8.bf16 (!%p213_p3), %v1585_v2  ;;  %v288_v10 = vunpack.c.h.s8.bf16 (!%p213_p3), %v1585_v2  ;;  %v289_v11 = vunpack.c.l.s8.bf16 (!%p213_p3), %v1591_v4  ;;  %v290_v12 = vunpack.c.h.s8.bf16 (!%p213_p3), %v1591_v4 }
   0x9   : > { %267 = vst [vmem:[#allocation3 + $0x20] sm:$0xff] (!%p213_p3), %v1520_v3  ;;  %268 = vst [vmem:[#allocation3 + $0x28] sm:$0xff] (!%p213_p3), %v1520_v3 }
   0xa   : > { %269 = vst [vmem:[#allocation3 + $0x30] sm:$0xff] (!%p213_p3), %v1520_v3  ;;  %270 = vst [vmem:[#allocation3 + $0x38] sm:$0xff] (!%p213_p3), %v1520_v3 }
   0xb   : > { %271 = vst [vmem:[#allocation3 + $0x40] sm:$0xff] (!%p213_p3), %v1520_v3  ;;  %272 = vst [vmem:[#allocation3 + $0x48] sm:$0xff] (!%p213_p3), %v1520_v3 }
   0xc   : > { %273 = vst [vmem:[#allocation3 + $0x50] sm:$0xff] (!%p213_p3), %v1520_v3  ;;  %274 = vst [vmem:[#allocation3 + $0x58] sm:$0xff] (!%p213_p3), %v1520_v3 }
   0xd   : > { %275 = vst [vmem:[#allocation3 + $0x60] sm:$0xff] (!%p213_p3), %v1520_v3  ;;  %276 = vst [vmem:[#allocation3 + $0x68] sm:$0xff] (!%p213_p3), %v1520_v3 }
   0xe   : > { %277 = vst [vmem:[#allocation3 + $0x70] sm:$0xff] %v1520_v3  ;;  %278 = vst [vmem:[#allocation3 + $0x78] sm:$0xff] %v1520_v3  ;;  %295 = sbr.rel (%p1155_p5) target bundleno = 273 (0x111), region = 48  ;;  %v1480_v13 = vld [vmem:[%s1794_s1] sm:$0xff] (!%p1155_p5)   ;;  %1326 = vmatprep.mubr.bf16.mxu0 (!%p1155_p5), %v283_v5  ;;  %1334 = vmatprep.mubr.bf16.mxu1 (!%p1155_p5), %v287_v9  ;;  %v1481_v14 = vld [vmem:[%s1794_s1 + $0x8] sm:$0xff] (!%p1155_p5)  }
   0xf   : > { %1310 = vmatprep.subr.bf16.mxu0 (!%p1155_p5), %v1480_v13  ;;  %1406 = vmatprep.subr.bf16.mxu1 (!%p1155_p5), %v1480_v13  ;;  %v1482_v15 = vld [vmem:[%s1794_s1 + $0x10] sm:$0xff] (!%p1155_p5)   ;;  %v1483_v16 = vld [vmem:[%s1794_s1 + $0x18] sm:$0xff] (!%p1155_p5)   ;;  %v1484_v17 = vld [vmem:[%s1794_s1 + $0x20] sm:$0xff] (!%p1155_p5)  }
  0x10   : > { %1311 = vmatpush3.bf16.msra.mxu0 (!%p1155_p5), %v1480_v13  ;;  %1414 = vmatpush3.bf16.msra.mxu1 (!%p1155_p5), %v1480_v13  ;;  %v1485_v18 = vld [vmem:[%s1794_s1 + $0x28] sm:$0xff] (!%p1155_p5)   ;;  %v1486_v19 = vld [vmem:[%s1794_s1 + $0x30] sm:$0xff] (!%p1155_p5)   ;;  %v1487_v20 = vld [vmem:[%s1794_s1 + $0x38] sm:$0xff] (!%p1155_p5)  }
  0x11   : > { %1312 = vmatprep.subr.bf16.mxu0 (!%p1155_p5), %v1481_v14  ;;  %1407 = vmatprep.subr.bf16.mxu1 (!%p1155_p5), %v1481_v14  ;;  %v298_v21 = vld [vmem:[#allocation3 + $0x10] sm:$0xff] (!%p1155_p5)  ;;  %v296_v23 = vld [vmem:[#allocation3] sm:$0xff] (!%p1155_p5)  ;;  %v299_v27 = vld [vmem:[#allocation3 + $0x18] sm:$0xff] (!%p1155_p5) }
  0x12   : > { %v304_v24 = vld [vmem:[#allocation3 + $0x40] sm:$0xff] (!%p1155_p5)  ;;  %v297_v33 = vld [vmem:[#allocation3 + $0x8] sm:$0xff] (!%p1155_p5)  ;;  %v302_v45 = vld [vmem:[#allocation3 + $0x30] sm:$0xff] (!%p1155_p5) }
  0x13   : > { %v306_v22 = vld [vmem:[#allocation3 + $0x50] sm:$0xff] (!%p1155_p5)  ;;  %v307_v28 = vld [vmem:[#allocation3 + $0x58] sm:$0xff] (!%p1155_p5)  ;;  %v305_v34 = vld [vmem:[#allocation3 + $0x48] sm:$0xff] (!%p1155_p5) }
  0x14   : > { %1313 = vmatpush3.bf16.msra.mxu0 (!%p1155_p5), %v1481_v14  ;;  %1415 = vmatpush3.bf16.msra.mxu1 (!%p1155_p5), %v1481_v14  ;;  %v300_v47 = vld [vmem:[#allocation3 + $0x20] sm:$0xff] (!%p1155_p5)  ;;  %v303_v51 = vld [vmem:[#allocation3 + $0x38] sm:$0xff] (!%p1155_p5)  ;;  %v301_v57 = vld [vmem:[#allocation3 + $0x28] sm:$0xff] (!%p1155_p5) }
  0x15   : > { %1314 = vmatprep.subr.bf16.mxu0 %v1482_v15  ;;  %1408 = vmatprep.subr.bf16.mxu1 %v1482_v15  ;;  %v310_v46 = vld [vmem:[#allocation3 + $0x70] sm:$0xff]  ;;  %v308_v48 = vld [vmem:[#allocation3 + $0x60] sm:$0xff]  ;;  %v311_v52 = vld [vmem:[#allocation3 + $0x78] sm:$0xff] }
  0x16   : > { %v309_v58 = vld [vmem:[#allocation3 + $0x68] sm:$0xff] }
  0x18   : > { %1315 = vmatpush3.bf16.msra.mxu0 %v1482_v15  ;;  %1416 = vmatpush3.bf16.msra.mxu1 %v1482_v15 }
  0x19   : > { %1316 = vmatprep.subr.bf16.mxu0 %v1483_v16  ;;  %1409 = vmatprep.subr.bf16.mxu1 %v1483_v16 }
  0x1c   : > { %1317 = vmatpush3.bf16.msra.mxu0 %v1483_v16  ;;  %1417 = vmatpush3.bf16.msra.mxu1 %v1483_v16 }
  0x1d   : > { %1318 = vmatprep.subr.bf16.mxu0 %v1484_v17  ;;  %1410 = vmatprep.subr.bf16.mxu1 %v1484_v17 }
  0x20   : > { %1319 = vmatpush3.bf16.msra.mxu0 %v1484_v17  ;;  %1418 = vmatpush3.bf16.msra.mxu1 %v1484_v17 }
  0x21   : > { %1320 = vmatprep.subr.bf16.mxu0 %v1485_v18  ;;  %1411 = vmatprep.subr.bf16.mxu1 %v1485_v18 }
  0x24   : > { %1321 = vmatpush3.bf16.msra.mxu0 %v1485_v18  ;;  %1419 = vmatpush3.bf16.msra.mxu1 %v1485_v18 }
  0x25   : > { %1322 = vmatprep.subr.bf16.mxu0 %v1486_v19  ;;  %1412 = vmatprep.subr.bf16.mxu1 %v1486_v19 }
  0x28   : > { %1323 = vmatpush3.bf16.msra.mxu0 %v1486_v19  ;;  %1420 = vmatpush3.bf16.msra.mxu1 %v1486_v19 }
  0x29   : > { %1324 = vmatprep.subr.bf16.mxu0 %v1487_v20  ;;  %1413 = vmatprep.subr.bf16.mxu1 %v1487_v20 }
  0x2c   : > { %1325 = vmatpush3.bf16.msra.mxu0 %v1487_v20  ;;  %1421 = vmatpush3.bf16.msra.mxu1 %v1487_v20 }
  0x2f   : > { %1327 = vmatmul.mubr.bf16.vlgmr.msra.gmra.mrb[0].mxu0 %v284_v6  ;;  %1335 = vmatmul.mubr.bf16.vlgmr.msra.gmra.mrb[0].mxu1 %v288_v10 }
  0x30   : > { %1330 = vmatprep.mubr.bf16.mxu0 %v285_v7  ;;  %1338 = vmatprep.mubr.bf16.mxu1 %v289_v11 }
  0x37   : > { %1331 = vmatmul.mubr.bf16.gmra.mrb[4].mxu0 %v286_v8  ;;  %1339 = vmatmul.mubr.bf16.gmra.mrb[4].mxu1 %v290_v12 }
 0x102   : > { %v1328_v25 = vpop.f32.mrb[0].mxu0  ;;  %v1336_v26 = vpop.f32.mrb[0].mxu1 }
 0x103   : > { %v479_v29 = vadd.f32 %v1328_v25, %v298_v21  ;;  %v487_v30 = vadd.f32 %v1336_v26, %v306_v22  ;;  %v414_v31 = vpop.f32.mrb[1].mxu0  ;;  %v446_v32 = vpop.f32.mrb[1].mxu1 }
 0x104   : > { %v477_v35 = vadd.f32 %v414_v31, %v296_v23  ;;  %v485_v36 = vadd.f32 %v446_v32, %v304_v24  ;;  %v1329_v37 = vpop.f32.mrb[2].mxu0  ;;  %v1337_v38 = vpop.f32.mrb[2].mxu1 }
 0x105   : > { %495 = vst [vmem:[#allocation3 + $0x10] sm:$0xff] %v479_v29  ;;  %503 = vst [vmem:[#allocation3 + $0x50] sm:$0xff] %v487_v30  ;;  %v480_v39 = vadd.f32 %v1329_v37, %v299_v27  ;;  %v488_v40 = vadd.f32 %v1337_v38, %v307_v28  ;;  %v417_v41 = vpop.f32.mrb[3].mxu0  ;;  %v449_v42 = vpop.f32.mrb[3].mxu1 }
 0x106   : > { %493 = vst [vmem:[#allocation3] sm:$0xff] %v477_v35  ;;  %501 = vst [vmem:[#allocation3 + $0x40] sm:$0xff] %v485_v36  ;;  %v478_v43 = vadd.f32 %v417_v41, %v297_v33  ;;  %v486_v44 = vadd.f32 %v449_v42, %v305_v34 }
 0x107   : > { %496 = vst [vmem:[#allocation3 + $0x18] sm:$0xff] %v480_v39  ;;  %504 = vst [vmem:[#allocation3 + $0x58] sm:$0xff] %v488_v40 }
 0x108   : > { %494 = vst [vmem:[#allocation3 + $0x8] sm:$0xff] %v478_v43  ;;  %502 = vst [vmem:[#allocation3 + $0x48] sm:$0xff] %v486_v44 }
 0x10a   : > { %v1332_v49 = vpop.f32.mrb[4].mxu0  ;;  %v1340_v50 = vpop.f32.mrb[4].mxu1 }
 0x10b   : > { %v483_v53 = vadd.f32 %v1332_v49, %v302_v45  ;;  %v491_v54 = vadd.f32 %v1340_v50, %v310_v46  ;;  %v430_v55 = vpop.f32.mrb[5].mxu0  ;;  %v462_v56 = vpop.f32.mrb[5].mxu1 }
 0x10c   : > { %v481_v59 = vadd.f32 %v430_v55, %v300_v47  ;;  %v489_v60 = vadd.f32 %v462_v56, %v308_v48  ;;  %v1333_v61 = vpop.f32.mrb[6].mxu0  ;;  %v1341_v62 = vpop.f32.mrb[6].mxu1 }
 0x10d   : > { %499 = vst [vmem:[#allocation3 + $0x30] sm:$0xff] %v483_v53  ;;  %507 = vst [vmem:[#allocation3 + $0x70] sm:$0xff] %v491_v54  ;;  %v484_v63 = vadd.f32 %v1333_v61, %v303_v51  ;;  %v492_v3 = vadd.f32 %v1341_v62, %v311_v52  ;;  %v433_v13 = vpop.f32.mrb[7].mxu0  ;;  %v465_v14 = vpop.f32.mrb[7].mxu1 }
 0x10e   : > { %497 = vst [vmem:[#allocation3 + $0x20] sm:$0xff] %v481_v59  ;;  %505 = vst [vmem:[#allocation3 + $0x60] sm:$0xff] %v489_v60  ;;  %v482_v15 = vadd.f32 %v433_v13, %v301_v57  ;;  %v490_v16 = vadd.f32 %v465_v14, %v309_v58 }
 0x10f   : > { %500 = vst [vmem:[#allocation3 + $0x38] sm:$0xff] %v484_v63  ;;  %508 = vst [vmem:[#allocation3 + $0x78] sm:$0xff] %v492_v3 }
 0x110   : > { %498 = vst [vmem:[#allocation3 + $0x28] sm:$0xff] %v482_v15  ;;  %506 = vst [vmem:[#allocation3 + $0x68] sm:$0xff] %v490_v16 }
 0x111 PF: > { %p509_p6 = scmp.eq.s32.totalorder %s1510_s18, 1  ;;  %p1164_p7 = scmp.ne.s32.totalorder %s1510_s18, 1 }
 0x112   : > { %v533_v17 = vld [vmem:[#allocation2] sm:$0xff] (!%p1164_p7)  ;;  %v534_v18 = vld [vmem:[#allocation2 + $0x8] sm:$0xff] (!%p1164_p7)  ;;  %1358 = vmatprep.mubr.bf16.mxu0 (!%p1164_p7), %v283_v5  ;;  %1366 = vmatprep.mubr.bf16.mxu1 (!%p1164_p7), %v287_v9  ;;  %v535_v19 = vld [vmem:[#allocation2 + $0x10] sm:$0xff] (!%p1164_p7) }
 0x113   : > { %512 = sbr.rel (%p1164_p7) target bundleno = 533 (0x215), region = 52  ;;  %1342 = vmatprep.subr.bf16.mxu0 (!%p1164_p7), %v533_v17  ;;  %1422 = vmatprep.subr.bf16.mxu1 (!%p1164_p7), %v533_v17  ;;  %v536_v20 = vld [vmem:[#allocation2 + $0x18] sm:$0xff] (!%p1164_p7)  ;;  %v537_v5 = vld [vmem:[#allocation2 + $0x20] sm:$0xff] (!%p1164_p7)  ;;  %v538_v9 = vld [vmem:[#allocation2 + $0x28] sm:$0xff] (!%p1164_p7) }
 0x114   : > { %1343 = vmatpush3.bf16.msra.mxu0 (!%p1164_p7), %v533_v17  ;;  %1430 = vmatpush3.bf16.msra.mxu1 (!%p1164_p7), %v533_v17  ;;  %v539_v21 = vld [vmem:[#allocation2 + $0x30] sm:$0xff] (!%p1164_p7)  ;;  %v540_v22 = vld [vmem:[#allocation2 + $0x38] sm:$0xff] (!%p1164_p7)  ;;  %v513_v25 = vld [vmem:[#allocation3] sm:$0xff] (!%p1164_p7) }
 0x115   : > { %1344 = vmatprep.subr.bf16.mxu0 (!%p1164_p7), %v534_v18  ;;  %1423 = vmatprep.subr.bf16.mxu1 (!%p1164_p7), %v534_v18  ;;  %v515_v23 = vld [vmem:[#allocation3 + $0x10] sm:$0xff] (!%p1164_p7)  ;;  %v521_v0 = vld [vmem:[#allocation3 + $0x40] sm:$0xff] (!%p1164_p7)  ;;  %v516_v2 = vld [vmem:[#allocation3 + $0x18] sm:$0xff] (!%p1164_p7) }
 0x116   : > { %v523_v24 = vld [vmem:[#allocation3 + $0x50] sm:$0xff] (!%p1164_p7)  ;;  %v514_v30 = vld [vmem:[#allocation3 + $0x8] sm:$0xff] (!%p1164_p7)  ;;  %v517_v39 = vld [vmem:[#allocation3 + $0x20] sm:$0xff] (!%p1164_p7) }
 0x117   : > { %v519_v37 = vld [vmem:[#allocation3 + $0x30] sm:$0xff] (!%p1164_p7)  ;;  %v525_v40 = vld [vmem:[#allocation3 + $0x60] sm:$0xff] (!%p1164_p7)  ;;  %v520_v43 = vld [vmem:[#allocation3 + $0x38] sm:$0xff] (!%p1164_p7) }
 0x118   : > { %1345 = vmatpush3.bf16.msra.mxu0 (!%p1164_p7), %v534_v18  ;;  %1431 = vmatpush3.bf16.msra.mxu1 (!%p1164_p7), %v534_v18  ;;  %v527_v38 = vld [vmem:[#allocation3 + $0x70] sm:$0xff] (!%p1164_p7)  ;;  %v528_v44 = vld [vmem:[#allocation3 + $0x78] sm:$0xff] (!%p1164_p7)  ;;  %v518_v49 = vld [vmem:[#allocation3 + $0x28] sm:$0xff] (!%p1164_p7) }
 0x119   : > { %1346 = vmatprep.subr.bf16.mxu0 (!%p1164_p7), %v535_v19  ;;  %1424 = vmatprep.subr.bf16.mxu1 (!%p1164_p7), %v535_v19  ;;  %v526_v50 = vld [vmem:[#allocation3 + $0x68] sm:$0xff] (!%p1164_p7) }
 0x11c   : > { %1347 = vmatpush3.bf16.msra.mxu0 %v535_v19  ;;  %1432 = vmatpush3.bf16.msra.mxu1 %v535_v19 }
 0x11d   : > { %1348 = vmatprep.subr.bf16.mxu0 %v536_v20  ;;  %1425 = vmatprep.subr.bf16.mxu1 %v536_v20 }
 0x120   : > { %1349 = vmatpush3.bf16.msra.mxu0 %v536_v20  ;;  %1433 = vmatpush3.bf16.msra.mxu1 %v536_v20 }
 0x121   : > { %1350 = vmatprep.subr.bf16.mxu0 %v537_v5  ;;  %1426 = vmatprep.subr.bf16.mxu1 %v537_v5 }
 0x124   : > { %1351 = vmatpush3.bf16.msra.mxu0 %v537_v5  ;;  %1434 = vmatpush3.bf16.msra.mxu1 %v537_v5 }
 0x125   : > { %1352 = vmatprep.subr.bf16.mxu0 %v538_v9  ;;  %1427 = vmatprep.subr.bf16.mxu1 %v538_v9 }
 0x128   : > { %1353 = vmatpush3.bf16.msra.mxu0 %v538_v9  ;;  %1435 = vmatpush3.bf16.msra.mxu1 %v538_v9 }
 0x129   : > { %1354 = vmatprep.subr.bf16.mxu0 %v539_v21  ;;  %1428 = vmatprep.subr.bf16.mxu1 %v539_v21 }
 0x12c   : > { %1355 = vmatpush3.bf16.msra.mxu0 %v539_v21  ;;  %1436 = vmatpush3.bf16.msra.mxu1 %v539_v21 }
 0x12d   : > { %1356 = vmatprep.subr.bf16.mxu0 %v540_v22  ;;  %1429 = vmatprep.subr.bf16.mxu1 %v540_v22 }
 0x130   : > { %1357 = vmatpush3.bf16.msra.mxu0 %v540_v22  ;;  %1437 = vmatpush3.bf16.msra.mxu1 %v540_v22 }
 0x133   : > { %1359 = vmatmul.mubr.bf16.vlgmr.msra.gmra.mrb[0].mxu0 %v284_v6  ;;  %1367 = vmatmul.mubr.bf16.vlgmr.msra.gmra.mrb[0].mxu1 %v288_v10  ;;  %v524_v10 = vld [vmem:[#allocation3 + $0x58] sm:$0xff] }
 0x134   : > { %1362 = vmatprep.mubr.bf16.mxu0 %v285_v7  ;;  %1370 = vmatprep.mubr.bf16.mxu1 %v289_v11  ;;  %v522_v11 = vld [vmem:[#allocation3 + $0x48] sm:$0xff] }
 0x13b   : > { %1363 = vmatmul.mubr.bf16.gmra.mrb[4].mxu0 %v286_v8  ;;  %1371 = vmatmul.mubr.bf16.gmra.mrb[4].mxu1 %v290_v12 }
 0x206   : > { %v1360_v6 = vpop.f32.mrb[0].mxu0  ;;  %v1368_v26 = vpop.f32.mrb[0].mxu1 }
 0x207   : > { %v640_v27 = vadd.f32 %v1360_v6, %v515_v23  ;;  %v648_v28 = vadd.f32 %v1368_v26, %v523_v24  ;;  %v575_v7 = vpop.f32.mrb[1].mxu0  ;;  %v607_v29 = vpop.f32.mrb[1].mxu1 }
 0x208   : > { %v638_v31 = vadd.f32 %v575_v7, %v513_v25  ;;  %v646_v1 = vadd.f32 %v607_v29, %v521_v0  ;;  %v1361_v8 = vpop.f32.mrb[2].mxu0  ;;  %v1369_v32 = vpop.f32.mrb[2].mxu1 }
 0x209   : > { %656 = vst [vmem:[#allocation3 + $0x10] sm:$0xff] %v640_v27  ;;  %664 = vst [vmem:[#allocation3 + $0x50] sm:$0xff] %v648_v28  ;;  %v641_v4 = vadd.f32 %v1361_v8, %v516_v2  ;;  %v649_v12 = vadd.f32 %v1369_v32, %v524_v10  ;;  %v578_v33 = vpop.f32.mrb[3].mxu0  ;;  %v610_v34 = vpop.f32.mrb[3].mxu1 }
 0x20a   : > { %654 = vst [vmem:[#allocation3] sm:$0xff] %v638_v31  ;;  %662 = vst [vmem:[#allocation3 + $0x40] sm:$0xff] %v646_v1  ;;  %v639_v35 = vadd.f32 %v578_v33, %v514_v30  ;;  %v647_v36 = vadd.f32 %v610_v34, %v522_v11 }
 0x20b   : > { %657 = vst [vmem:[#allocation3 + $0x18] sm:$0xff] %v641_v4  ;;  %665 = vst [vmem:[#allocation3 + $0x58] sm:$0xff] %v649_v12 }
 0x20c   : > { %655 = vst [vmem:[#allocation3 + $0x8] sm:$0xff] %v639_v35  ;;  %663 = vst [vmem:[#allocation3 + $0x48] sm:$0xff] %v647_v36 }
 0x20e   : > { %v1364_v41 = vpop.f32.mrb[4].mxu0  ;;  %v1372_v42 = vpop.f32.mrb[4].mxu1 }
 0x20f   : > { %v644_v45 = vadd.f32 %v1364_v41, %v519_v37  ;;  %v652_v46 = vadd.f32 %v1372_v42, %v527_v38  ;;  %v591_v47 = vpop.f32.mrb[5].mxu0  ;;  %v623_v48 = vpop.f32.mrb[5].mxu1 }
 0x210   : > { %v642_v51 = vadd.f32 %v591_v47, %v517_v39  ;;  %v650_v52 = vadd.f32 %v623_v48, %v525_v40  ;;  %v1365_v53 = vpop.f32.mrb[6].mxu0  ;;  %v1373_v54 = vpop.f32.mrb[6].mxu1 }
 0x211   : > { %660 = vst [vmem:[#allocation3 + $0x30] sm:$0xff] %v644_v45  ;;  %668 = vst [vmem:[#allocation3 + $0x70] sm:$0xff] %v652_v46  ;;  %v645_v55 = vadd.f32 %v1365_v53, %v520_v43  ;;  %v653_v56 = vadd.f32 %v1373_v54, %v528_v44  ;;  %v594_v57 = vpop.f32.mrb[7].mxu0  ;;  %v626_v58 = vpop.f32.mrb[7].mxu1 }
 0x212   : > { %658 = vst [vmem:[#allocation3 + $0x20] sm:$0xff] %v642_v51  ;;  %666 = vst [vmem:[#allocation3 + $0x60] sm:$0xff] %v650_v52  ;;  %v643_v59 = vadd.f32 %v594_v57, %v518_v49  ;;  %v651_v60 = vadd.f32 %v626_v58, %v526_v50 }
 0x213   : > { %661 = vst [vmem:[#allocation3 + $0x38] sm:$0xff] %v645_v55  ;;  %669 = vst [vmem:[#allocation3 + $0x78] sm:$0xff] %v653_v56 }
 0x214   : > { %659 = vst [vmem:[#allocation3 + $0x28] sm:$0xff] %v643_v59  ;;  %667 = vst [vmem:[#allocation3 + $0x68] sm:$0xff] %v651_v60 }
 0x215 PF: > { %673 = sbr.rel (!%p292_p4) target bundleno = 792 (0x318), region = 56  ;;  %v1488_v61 = vld [vmem:[%s1796_s3] sm:$0xff] (%p292_p4)   ;;  %v1489_v62 = vld [vmem:[%s1796_s3 + $0x8] sm:$0xff] (%p292_p4)   ;;  %v1490_v63 = vld [vmem:[%s1796_s3 + $0x10] sm:$0xff] (%p292_p4)  }
 0x216   : > { %1374 = vmatprep.subr.bf16.mxu0 (%p292_p4), %v1488_v61  ;;  %1438 = vmatprep.subr.bf16.mxu1 (%p292_p4), %v1488_v61  ;;  %v1491_v3 = vld [vmem:[%s1796_s3 + $0x18] sm:$0xff] (%p292_p4)   ;;  %v674_v13 = vld [vmem:[#allocation3] sm:$0xff] (%p292_p4)  ;;  %v675_v14 = vld [vmem:[#allocation3 + $0x8] sm:$0xff] (%p292_p4) }
 0x217   : > { %1375 = vmatpush3.bf16.msra.mxu0 (%p292_p4), %v1488_v61  ;;  %1446 = vmatpush3.bf16.msra.mxu1 (%p292_p4), %v1488_v61  ;;  %v1677_v15 = vld [vmem:[%s1795_s2] ss:$0 sm:$0xff] (%p292_p4)  ;;  %v683_v19 = vld [vmem:[#allocation3 + $0x48] sm:$0xff] (%p292_p4)  ;;  %v1494_v26 = vld [vmem:[%s1796_s3 + $0x30] sm:$0xff] (%p292_p4)  }
 0x218   : > { %1376 = vmatprep.subr.bf16.mxu0 (%p292_p4), %v1489_v62  ;;  %1439 = vmatprep.subr.bf16.mxu1 (%p292_p4), %v1489_v62  ;;  %v697_v16 = vadd.f32 (%p292_p4), %v1677_v15, %v674_v13  ;;  %v698_v17 = vadd.f32 (%p292_p4), %v1677_v15, %v675_v14  ;;  %v682_v18 = vld [vmem:[#allocation3 + $0x40] sm:$0xff] (%p292_p4)  ;;  %v706_v5 = vadd.f32 (%p292_p4), %v1677_v15, %v683_v19  ;;  %v1493_v6 = vld [vmem:[%s1796_s3 + $0x28] sm:$0xff] (%p292_p4)   ;;  %v676_v2 = vld [vmem:[#allocation3 + $0x10] sm:$0xff] (%p292_p4) }
 0x219   : > { %v705_v20 = vadd.f32 (%p292_p4), %v1677_v15, %v682_v18  ;;  %v1492_v22 = vld [vmem:[%s1796_s3 + $0x20] sm:$0xff] (%p292_p4)   ;;  %v677_v10 = vld [vmem:[#allocation3 + $0x18] sm:$0xff] (%p292_p4)  ;;  %v684_v27 = vld [vmem:[#allocation3 + $0x50] sm:$0xff] (%p292_p4)  ;;  %v699_v31 = vadd.f32 (%p292_p4), %v1677_v15, %v676_v2 }
 0x21a   : > { %v713_v9 = vmax.f32 (%p292_p4), %v697_v16, 0.0  ;;  %v714_v21 = vmax.f32 (%p292_p4), %v698_v17, 0.0  ;;  %v722_v24 = vmax.f32 (%p292_p4), %v706_v5, 0.0  ;;  %v685_v28 = vld [vmem:[#allocation3 + $0x58] sm:$0xff] (%p292_p4)  ;;  %v678_v7 = vld [vmem:[#allocation3 + $0x20] sm:$0xff] (%p292_p4)  ;;  %v700_v1 = vadd.f32 (%p292_p4), %v1677_v15, %v677_v10  ;;  %v680_v40 = vld [vmem:[#allocation3 + $0x30] sm:$0xff] (%p292_p4) }
 0x21b   : > { %1377 = vmatpush3.bf16.msra.mxu0 (%p292_p4), %v1489_v62  ;;  %1447 = vmatpush3.bf16.msra.mxu1 (%p292_p4), %v1489_v62  ;;  %v721_v23 = vmax.f32 (%p292_p4), %v705_v20, 0.0  ;;  %v679_v29 = vld [vmem:[#allocation3 + $0x28] sm:$0xff] (%p292_p4)  ;;  %v686_v30 = vld [vmem:[#allocation3 + $0x60] sm:$0xff] (%p292_p4)  ;;  %v707_v8 = vadd.f32 (%p292_p4), %v1677_v15, %v684_v27  ;;  %v708_v32 = vadd.f32 (%p292_p4), %v1677_v15, %v685_v28  ;;  %v701_v4 = vadd.f32 (%p292_p4), %v1677_v15, %v678_v7  ;;  %v1495_v35 = vld [vmem:[%s1796_s3 + $0x38] sm:$0xff] (%p292_p4)  }
 0x21c   : > { %1378 = vmatprep.subr.bf16.mxu0 %v1490_v63  ;;  %1440 = vmatprep.subr.bf16.mxu1 %v1490_v63  ;;  %v729_v25 = vpack.c.bf16 %v714_v21, %v713_v9  ;;  %v687_v11 = vld [vmem:[#allocation3 + $0x68] sm:$0xff]  ;;  %v702_v12 = vadd.f32 %v1677_v15, %v679_v29  ;;  %v709_v33 = vadd.f32 %v1677_v15, %v686_v30  ;;  %v715_v36 = vmax.f32 %v699_v31, 0.0  ;;  %v681_v41 = vld [vmem:[#allocation3 + $0x38] sm:$0xff]  ;;  %v688_v46 = vld [vmem:[#allocation3 + $0x70] sm:$0xff] }
 0x21d   : > { %v733_v0 = vpack.c.bf16 %v722_v24, %v721_v23  ;;  %v710_v34 = vadd.f32 %v1677_v15, %v687_v11  ;;  %v716_v37 = vmax.f32 %v700_v1, 0.0  ;;  %v723_v38 = vmax.f32 %v707_v8, 0.0  ;;  %v689_v47 = vld [vmem:[#allocation3 + $0x78] sm:$0xff] }
 0x21e   : > { %1390 = vmatprep.mubr.bf16.mxu0 %v729_v25  ;;  %v724_v39 = vmax.f32 %v708_v32, 0.0  ;;  %v717_v42 = vmax.f32 %v701_v4, 0.0  ;;  %v718_v43 = vmax.f32 %v702_v12, 0.0  ;;  %v725_v44 = vmax.f32 %v709_v33, 0.0 }
 0x21f   : > { %1379 = vmatpush3.bf16.msra.mxu0 %v1490_v63  ;;  %1448 = vmatpush3.bf16.msra.mxu1 %v1490_v63  ;;  %v726_v45 = vmax.f32 %v710_v34, 0.0  ;;  %v730_v48 = vpack.c.bf16 %v716_v37, %v715_v36  ;;  %v703_v49 = vadd.f32 %v1677_v15, %v680_v40  ;;  %v704_v51 = vadd.f32 %v1677_v15, %v681_v41 }
 0x220   : > { %1380 = vmatprep.subr.bf16.mxu0 %v1491_v3  ;;  %1441 = vmatprep.subr.bf16.mxu1 %v1491_v3  ;;  %v734_v50 = vpack.c.bf16 %v724_v39, %v723_v38  ;;  %v711_v52 = vadd.f32 %v1677_v15, %v688_v46  ;;  %v712_v53 = vadd.f32 %v1677_v15, %v689_v47  ;;  %v1521_v62 = vmov 0  }
 0x221   : > { %1398 = vmatprep.mubr.bf16.mxu1 %v733_v0  ;;  %v731_v54 = vpack.c.bf16 %v718_v43, %v717_v42  ;;  %v735_v55 = vpack.c.bf16 %v726_v45, %v725_v44  ;;  %v719_v56 = vmax.f32 %v703_v49, 0.0  ;;  %v720_v57 = vmax.f32 %v704_v51, 0.0  ;;  %919 = vst [vmem:[%s1798_s5] sm:$0xf] %v1521_v62  ;;  %920 = vst [vmem:[%s1798_s5 + $0x4] sm:$0xf] %v1521_v62 }
 0x222   : > { %v727_v58 = vmax.f32 %v711_v52, 0.0  ;;  %v728_v59 = vmax.f32 %v712_v53, 0.0  ;;  %921 = vst [vmem:[%s1798_s5 + $0x8] sm:$0xf] %v1521_v62  ;;  %922 = vst [vmem:[%s1798_s5 + $0xc] sm:$0xf] %v1521_v62 }
 0x223   : > { %1381 = vmatpush3.bf16.msra.mxu0 %v1491_v3  ;;  %1449 = vmatpush3.bf16.msra.mxu1 %v1491_v3  ;;  %v732_v60 = vpack.c.bf16 %v720_v57, %v719_v56  ;;  %923 = vst [vmem:[%s1798_s5 + $0x10] sm:$0xf] %v1521_v62  ;;  %924 = vst [vmem:[%s1798_s5 + $0x14] sm:$0xf] %v1521_v62 }
 0x224   : > { %1382 = vmatprep.subr.bf16.mxu0 %v1492_v22  ;;  %1442 = vmatprep.subr.bf16.mxu1 %v1492_v22  ;;  %v736_v61 = vpack.c.bf16 %v728_v59, %v727_v58  ;;  %925 = vst [vmem:[%s1798_s5 + $0x18] sm:$0xf] %v1521_v62  ;;  %926 = vst [vmem:[%s1798_s5 + $0x1c] sm:$0xf] %v1521_v62 }
 0x225   : > { %927 = vst [vmem:[%s1798_s5 + $0x20] sm:$0xf] %v1521_v62  ;;  %928 = vst [vmem:[%s1798_s5 + $0x24] sm:$0xf] %v1521_v62 }
 0x226   : > { %929 = vst [vmem:[%s1798_s5 + $0x28] sm:$0xf] %v1521_v62  ;;  %930 = vst [vmem:[%s1798_s5 + $0x2c] sm:$0xf] %v1521_v62 }
 0x227   : > { %1383 = vmatpush3.bf16.msra.mxu0 %v1492_v22  ;;  %1450 = vmatpush3.bf16.msra.mxu1 %v1492_v22  ;;  %931 = vst [vmem:[%s1798_s5 + $0x30] sm:$0xf] %v1521_v62  ;;  %932 = vst [vmem:[%s1798_s5 + $0x34] sm:$0xf] %v1521_v62 }
 0x228   : > { %1384 = vmatprep.subr.bf16.mxu0 %v1493_v6  ;;  %1443 = vmatprep.subr.bf16.mxu1 %v1493_v6  ;;  %933 = vst [vmem:[%s1798_s5 + $0x38] sm:$0xf] %v1521_v62  ;;  %934 = vst [vmem:[%s1798_s5 + $0x3c] sm:$0xf] %v1521_v62 }
 0x22b   : > { %1385 = vmatpush3.bf16.msra.mxu0 %v1493_v6  ;;  %1451 = vmatpush3.bf16.msra.mxu1 %v1493_v6 }
 0x22c   : > { %1386 = vmatprep.subr.bf16.mxu0 %v1494_v26  ;;  %1444 = vmatprep.subr.bf16.mxu1 %v1494_v26 }
 0x22f   : > { %1387 = vmatpush3.bf16.msra.mxu0 %v1494_v26  ;;  %1452 = vmatpush3.bf16.msra.mxu1 %v1494_v26 }
 0x230   : > { %1388 = vmatprep.subr.bf16.mxu0 %v1495_v35  ;;  %1445 = vmatprep.subr.bf16.mxu1 %v1495_v35 }
 0x233   : > { %1389 = vmatpush3.bf16.msra.mxu0 %v1495_v35  ;;  %1453 = vmatpush3.bf16.msra.mxu1 %v1495_v35 }
 0x236   : > { %1391 = vmatmul.mubr.bf16.vlgmr.msra.gmra.mrb[0].mxu0 %v730_v48  ;;  %1399 = vmatmul.mubr.bf16.vlgmr.msra.gmra.mrb[0].mxu1 %v734_v50 }
 0x237   : > { %1394 = vmatprep.mubr.bf16.mxu0 %v731_v54  ;;  %1402 = vmatprep.mubr.bf16.mxu1 %v735_v55 }
 0x23e   : > { %1395 = vmatmul.mubr.bf16.gmra.mrb[4].mxu0 %v732_v60  ;;  %1403 = vmatmul.mubr.bf16.gmra.mrb[4].mxu1 %v736_v61 }
 0x309   : > { %v1392_v63 = vpop.f32.mrb[0].mxu0  ;;  %v1400_v3 = vpop.f32.mrb[0].mxu1 }
 0x30a   : > { %v835_v13 = vpop.f32.mrb[1].mxu0  ;;  %v867_v14 = vpop.f32.mrb[1].mxu1 }
 0x30b   : > { %v1393_v15 = vpop.f32.mrb[2].mxu0  ;;  %v1401_v16 = vpop.f32.mrb[2].mxu1 }
 0x30c   : > { %v900_v17 = vpack.c.bf16 %v1393_v15, %v1392_v63  ;;  %v904_v18 = vpack.c.bf16 %v1401_v16, %v1400_v3  ;;  %v838_v19 = vpop.f32.mrb[3].mxu0  ;;  %v870_v20 = vpop.f32.mrb[3].mxu1 }
 0x30d   : > { %v899_v5 = vpack.c.bf16 %v838_v19, %v835_v13  ;;  %v903_v9 = vpack.c.bf16 %v870_v20, %v867_v14 }
 0x30e   : > { %912 = vst [vmem:[#allocation2 + $0x8] sm:$0xff] %v900_v17  ;;  %916 = vst [vmem:[#allocation2 + $0x28] sm:$0xff] %v904_v18 }
 0x30f   : > { %911 = vst [vmem:[#allocation2] sm:$0xff] %v899_v5  ;;  %915 = vst [vmem:[#allocation2 + $0x20] sm:$0xff] %v903_v9 }
 0x311   : > { %v1396_v21 = vpop.f32.mrb[4].mxu0  ;;  %v1404_v22 = vpop.f32.mrb[4].mxu1 }
 0x312   : > { %v851_v23 = vpop.f32.mrb[5].mxu0  ;;  %v883_v24 = vpop.f32.mrb[5].mxu1 }
 0x313   : > { %v1397_v25 = vpop.f32.mrb[6].mxu0  ;;  %v1405_v0 = vpop.f32.mrb[6].mxu1 }
 0x314   : > { %v902_v6 = vpack.c.bf16 %v1397_v25, %v1396_v21  ;;  %v906_v26 = vpack.c.bf16 %v1405_v0, %v1404_v22  ;;  %v854_v2 = vpop.f32.mrb[7].mxu0  ;;  %v886_v10 = vpop.f32.mrb[7].mxu1 }
 0x315   : > { %v901_v27 = vpack.c.bf16 %v854_v2, %v851_v23  ;;  %v905_v28 = vpack.c.bf16 %v886_v10, %v883_v24 }
 0x316   : > { %914 = vst [vmem:[#allocation2 + $0x18] sm:$0xff] %v902_v6  ;;  %918 = vst [vmem:[#allocation2 + $0x38] sm:$0xff] %v906_v26 }
 0x317   : > { %913 = vst [vmem:[#allocation2 + $0x10] sm:$0xff] %v901_v27  ;;  %917 = vst [vmem:[#allocation2 + $0x30] sm:$0xff] %v905_v28 }
 0x318 PF: > { %938 = sbr.rel (!%p509_p6) target bundleno = 808 (0x328), region = 60  ;;  %v939_v7 = vld [vmem:[#allocation3] sm:$0xff] (%p509_p6)  ;;  %v940_v29 = vld [vmem:[#allocation3 + $0x8] sm:$0xff] (%p509_p6)  ;;  %v941_v1 = vld [vmem:[#allocation3 + $0x10] sm:$0xff] (%p509_p6) }
 0x319   : > { %v1176_v30 = vld [vmem:[%s1797_s4] ss:$0 sm:$0xff] (%p509_p6)  ;;  %v942_v8 = vld [vmem:[#allocation3 + $0x18] sm:$0xff] (%p509_p6)  ;;  %v944_v33 = vld [vmem:[#allocation3 + $0x28] sm:$0xff] (%p509_p6) }
 0x31a   : > { %v962_v11 = vadd.f32 (%p509_p6), %v1176_v30, %v939_v7  ;;  %v963_v31 = vadd.f32 (%p509_p6), %v1176_v30, %v940_v29  ;;  %v943_v32 = vld [vmem:[#allocation3 + $0x20] sm:$0xff] (%p509_p6)  ;;  %v964_v4 = vadd.f32 (%p509_p6), %v1176_v30, %v941_v1  ;;  %v965_v12 = vadd.f32 (%p509_p6), %v1176_v30, %v942_v8  ;;  %v945_v35 = vld [vmem:[#allocation3 + $0x30] sm:$0xff] (%p509_p6)  ;;  %v946_v36 = vld [vmem:[#allocation3 + $0x38] sm:$0xff] (%p509_p6) }
 0x31b   : > { %v966_v34 = vadd.f32 (%p509_p6), %v1176_v30, %v943_v32  ;;  %v967_v39 = vadd.f32 (%p509_p6), %v1176_v30, %v944_v33  ;;  %v968_v40 = vadd.f32 (%p509_p6), %v1176_v30, %v945_v35  ;;  %v947_v41 = vld [vmem:[#allocation3 + $0x40] sm:$0xff] (%p509_p6)  ;;  %v948_v42 = vld [vmem:[#allocation3 + $0x48] sm:$0xff] (%p509_p6)  ;;  %v949_v43 = vld [vmem:[#allocation3 + $0x50] sm:$0xff] (%p509_p6)  ;;  %v969_v47 = vadd.f32 (%p509_p6), %v1176_v30, %v946_v36 }
 0x31c   : > { %v978_v37 = vmax.f32 (%p509_p6), %v962_v11, 0.0  ;;  %v979_v38 = vmax.f32 (%p509_p6), %v963_v31, 0.0  ;;  %v980_v44 = vmax.f32 (%p509_p6), %v964_v4, 0.0  ;;  %v981_v45 = vmax.f32 (%p509_p6), %v965_v12, 0.0  ;;  %v950_v48 = vld [vmem:[#allocation3 + $0x58] sm:$0xff] (%p509_p6)  ;;  %v951_v49 = vld [vmem:[#allocation3 + $0x60] sm:$0xff] (%p509_p6) }
 0x31d   : > { %v982_v46 = vmax.f32 (%p509_p6), %v966_v34, 0.0  ;;  %v983_v51 = vmax.f32 (%p509_p6), %v967_v39, 0.0  ;;  %v984_v52 = vmax.f32 (%p509_p6), %v968_v40, 0.0  ;;  %v970_v53 = vadd.f32 (%p509_p6), %v1176_v30, %v947_v41  ;;  %v952_v54 = vld [vmem:[#allocation3 + $0x68] sm:$0xff] (%p509_p6)  ;;  %v953_v59 = vld [vmem:[#allocation3 + $0x70] sm:$0xff] (%p509_p6)  ;;  %v954_v60 = vld [vmem:[#allocation3 + $0x78] sm:$0xff] (%p509_p6) }
 0x31e   : > { %v1218_v50 = vpack.c.bf16 (%p509_p6), %v979_v38, %v978_v37  ;;  %v1223_v55 = vpack.c.bf16 (%p509_p6), %v981_v45, %v980_v44  ;;  %v985_v56 = vmax.f32 (%p509_p6), %v969_v47, 0.0  ;;  %v971_v57 = vadd.f32 (%p509_p6), %v1176_v30, %v948_v42 }
 0x31f   : > { %v972_v58 = vadd.f32 %v1176_v30, %v949_v43  ;;  %v1228_v61 = vpack.c.bf16 %v983_v51, %v982_v46  ;;  %v986_v62 = vmax.f32 %v970_v53, 0.0  ;;  %v973_v63 = vadd.f32 %v1176_v30, %v950_v48 }
 0x320   : > { %1219 = vst [vmem:[%s1798_s5] sm:$0xff] %v1218_v50   ;;  %v974_v3 = vadd.f32 %v1176_v30, %v951_v49  ;;  %1255 = vst [vmem:[%s1798_s5 + $0x8] sm:$0xff] %v1223_v55   ;;  %v1233_v13 = vpack.c.bf16 %v985_v56, %v984_v52  ;;  %v987_v14 = vmax.f32 %v971_v57, 0.0  ;;  %v975_v16 = vadd.f32 %v1176_v30, %v952_v54 }
 0x321   : > { %v988_v15 = vmax.f32 %v972_v58, 0.0  ;;  %1256 = vst [vmem:[%s1798_s5 + $0x10] sm:$0xff] %v1228_v61   ;;  %v989_v17 = vmax.f32 %v973_v63, 0.0  ;;  %v976_v19 = vadd.f32 %v1176_v30, %v953_v59  ;;  %v977_v20 = vadd.f32 %v1176_v30, %v954_v60 }
 0x322   : > { %v990_v18 = vmax.f32 %v974_v3, 0.0  ;;  %1257 = vst [vmem:[%s1798_s5 + $0x18] sm:$0xff] %v1233_v13   ;;  %v1238_v5 = vpack.c.bf16 %v987_v14, %v986_v62  ;;  %v991_v9 = vmax.f32 %v975_v16, 0.0 }
 0x323   : > { %v1243_v21 = vpack.c.bf16 %v989_v17, %v988_v15  ;;  %v992_v22 = vmax.f32 %v976_v19, 0.0  ;;  %v993_v23 = vmax.f32 %v977_v20, 0.0 }
 0x324   : > { %1258 = vst [vmem:[%s1798_s5 + $0x20] sm:$0xff] %v1238_v5   ;;  %v1248_v24 = vpack.c.bf16 %v991_v9, %v990_v18 }
 0x325   : > { %1259 = vst [vmem:[%s1798_s5 + $0x28] sm:$0xff] %v1243_v21   ;;  %v1253_v25 = vpack.c.bf16 %v993_v23, %v992_v22 }
 0x326   : > { %1260 = vst [vmem:[%s1798_s5 + $0x30] sm:$0xff] %v1248_v24  }
 0x327   : > { %1261 = vst [vmem:[%s1798_s5 + $0x38] sm:$0xff] %v1253_v25  }
 0x328 PF: > { %s15_s20 = sadd.s32 1, %s1518_s20   ;;  %s1799_s18 = smov %s1514_s19 }
 0x329   : > { %p12_p8 = scmp.ge.s32.totalorder %s15_s20, 4   ;;  %s1800_s19 = smov %s1802_s21 }
 0x32b   :  { %14 = sbr.rel (!%p12_p8) target bundleno = 2 (0x2), region = 93 }

</bundles_post_ra>
